<compile_context>
chip_gen: v6e
topology: v6e:2x2x1
jax: 0.10.0
libtpu: 0.0.40
codegen_flags: <defaults>
</compile_context>

<pallas_src>
import jax
import jax.numpy as jnp
from jax.experimental import pallas as pl
from jax.experimental.pallas import tpu as pltpu

IN_FEATURES = 32
LATENT = 64
OUT_FEATURES = 256

TB_MAX = 8192  # batch tile (sweepable); out double-buffer <= 16 MiB f32 at 8192


def _round_up(x, m):
    return ((x + m - 1) // m) * m


def sae411_kernel(x_ref, we_ref, be_ref, wf_ref, bd_ref, o_ref):
    # Encoder4: Linear + ReLU.  MXU matmul, f32 accumulate, bias + ReLU in f32.
    h = jnp.dot(x_ref[...], we_ref[...], preferred_element_type=jnp.float32) + be_ref[...]
    x1 = jnp.maximum(h, 0.0)

    # (x1 @ D) @ Wd + bd  ==  x1 @ (D @ Wd) + bd   (D folded into Wd once, in wrapper)
    x3 = jnp.dot(x1.astype(wf_ref.dtype), wf_ref[...],
                 preferred_element_type=jnp.float32) + bd_ref[...]

    o_ref[...] = x3.astype(o_ref.dtype)


def fold_dictionary(params, D):
    """Fold the dictionary matmul into the decoder weight (exact: no
    nonlinearity between x1 @ D and the decoder's linear map).  Call this ONCE
    (outside the per-step path); under jit with static weights it constant-folds."""
    wf = jnp.dot(D.astype(jnp.float32), params["wd"].astype(jnp.float32))
    return {
        "we": params["we"].astype(jnp.float32),
        "be": params["be"].astype(jnp.float32),
        "wf": wf,
        "bd": params["bd"].astype(jnp.float32),
    }


def sae411_forward(x, fused_params, *, out_dtype=jnp.float32):
    """x: (B, IN_FEATURES) -> (B, OUT_FEATURES).

    Pass out_dtype=jnp.bfloat16 if downstream accepts it: the kernel is
    HBM-store-bound, so halving output bytes is ~1.8-1.9x end-to-end.
    """
    we, be, wf, bd = (fused_params["we"], fused_params["be"],
                      fused_params["wf"], fused_params["bd"])
    B = x.shape[0]

    x_c = x.astype(jnp.float32)

    # Pad only to a multiple of 8 (sublane granule), NOT to a multiple of TB.
    B_pad = _round_up(B, 8)
    if B_pad != B:
        x_c = jnp.pad(x_c, ((0, B_pad - B), (0, 0)))

    # Batch tile: as large as possible (amortize per-step overhead), but keep
    # >=2 grid steps when B >= 16 so v7x's two TensorCores both get work.
    TB = min(TB_MAX, B_pad)
    if B_pad >= 16:
        TB = min(TB, _round_up(pl.cdiv(B_pad, 2), 8))
    grid = (pl.cdiv(B_pad, TB),)  # ragged last block handled by Pallas

    out_itemsize = jnp.dtype(out_dtype).itemsize
    cost = pl.CostEstimate(
        flops=2 * B_pad * (IN_FEATURES * LATENT + LATENT * OUT_FEATURES),
        transcendentals=0,
        bytes_accessed=(
            B_pad * IN_FEATURES * x_c.dtype.itemsize            # x in
            + B_pad * OUT_FEATURES * out_itemsize                # out (dominant)
            + IN_FEATURES * LATENT * we.dtype.itemsize           # resident weights
            + LATENT * OUT_FEATURES * wf.dtype.itemsize
            + (LATENT + OUT_FEATURES) * 4                        # biases
        ),
    )

    out = pl.pallas_call(
        sae411_kernel,
        out_shape=jax.ShapeDtypeStruct((B_pad, OUT_FEATURES), out_dtype),
        grid=grid,
        in_specs=[
            pl.BlockSpec((TB, IN_FEATURES), lambda i: (i, 0)),       # x (tiled)
            pl.BlockSpec((IN_FEATURES, LATENT), lambda i: (0, 0)),   # encoder W (resident)
            pl.BlockSpec((1, LATENT), lambda i: (0, 0)),             # encoder b (resident)
            pl.BlockSpec((LATENT, OUT_FEATURES), lambda i: (0, 0)),  # D @ Wd (resident)
            pl.BlockSpec((1, OUT_FEATURES), lambda i: (0, 0)),       # decoder b (resident)
        ],
        out_specs=pl.BlockSpec((TB, OUT_FEATURES), lambda i: (i, 0)),
        compiler_params=pltpu.CompilerParams(
            dimension_semantics=("parallel",),
            # Large TB double-buffers exceed v5e's 16 MiB default scoped VMEM;
            # 32 MiB is plenty here and stays well inside v7x's 64 MiB physical.
            vmem_limit_bytes=32 << 20,
        ),
        cost_estimate=cost,
    )(x_c, we, be, wf, bd)

    return out[:B] if B_pad != B else out


def sae411_apply(x, params, D, *, out_dtype=jnp.float32):
    """Convenience wrapper matching the original forward(x, D) signature."""
    return sae411_forward(x, fold_dictionary(params, D), out_dtype=out_dtype)


def init_params(key):
    k1, k2, k3, k4 = jax.random.split(key, 4)
    we = jax.random.normal(k1, (IN_FEATURES, LATENT), jnp.float32) * (1.0 / IN_FEATURES ** 0.5)
    be = jax.random.normal(k2, (1, LATENT), jnp.float32) * 0.01
    wd = jax.random.normal(k3, (LATENT, OUT_FEATURES), jnp.float32) * (1.0 / LATENT ** 0.5)
    bd = jax.random.normal(k4, (1, OUT_FEATURES), jnp.float32) * 0.01
    return {"we": we, "be": be, "wd": wd, "bd": bd}


def sae411_ref(x, params, D):
    # Original (unfused, f32) forward semantics.
    x1 = jnp.maximum(x @ params["we"] + params["be"], 0.0)
    x2 = x1 @ D
    return x2 @ params["wd"] + params["bd"]


if __name__ == "__main__":
    key = jax.random.PRNGKey(0)
    kp, kx, kd = jax.random.split(key, 3)

    params = init_params(kp)
    x = jax.random.normal(kx, (8, IN_FEATURES), jnp.float32)  # batch=8
    D = jax.random.normal(kd, (LATENT, LATENT), jnp.float32) * (1.0 / LATENT ** 0.5)

    # Fold D @ Wd once, outside the per-call path.
    fused = fold_dictionary(params, D)

    out = sae411_forward(x, fused)          # f32 output (module semantics)
    out = jax.block_until_ready(out)

    ref = sae411_ref(x, params, D)
    assert out.shape == (8, OUT_FEATURES), out.shape
    # f32 operands; remaining error is TPU default matmul precision + D-fold rounding.
    assert jnp.allclose(out, ref, atol=5e-2, rtol=5e-2), "mismatch vs JAX reference"

    print("KERNEL_OK")
</pallas_src>

<mosaic_0001>
module attributes {stable_mosaic.version = 11 : i64} {
  func.func @sae411_kernel(%arg0: i32, %arg1: memref<8x32xf32, #tpu.memory_space<vmem>>, %arg2: memref<32x64xf32, #tpu.memory_space<vmem>>, %arg3: memref<1x64xf32, #tpu.memory_space<vmem>>, %arg4: memref<64x256xf32, #tpu.memory_space<vmem>>, %arg5: memref<1x256xf32, #tpu.memory_space<vmem>>, %arg6: memref<8x256xf32, #tpu.memory_space<vmem>>) attributes {dimension_semantics = [#tpu.dimension_semantics<parallel>], iteration_bounds = array<i64: 1>, scalar_prefetch = 0 : i64, scratch_operands = 0 : i64, tpu.core_type = #tpu.core_type<tc>, window_params = [{transform_indices = @transform_0, window_bounds = array<i64: 8, 32>}, {pipeline_mode = #tpu.pipeline_mode<synchronous>, transform_indices = @transform_1, window_bounds = array<i64: 32, 64>}, {pipeline_mode = #tpu.pipeline_mode<synchronous>, transform_indices = @transform_2, window_bounds = array<i64: 1, 64>}, {pipeline_mode = #tpu.pipeline_mode<synchronous>, transform_indices = @transform_3, window_bounds = array<i64: 64, 256>}, {pipeline_mode = #tpu.pipeline_mode<synchronous>, transform_indices = @transform_4, window_bounds = array<i64: 1, 256>}, {transform_indices = @transform_5, window_bounds = array<i64: 8, 256>}]} {
    %c0 = arith.constant 0 : index
    %c0_0 = arith.constant 0 : index
    %0 = vector.load %arg1[%c0, %c0_0] : memref<8x32xf32, #tpu.memory_space<vmem>>, vector<8x32xf32>
    %c0_1 = arith.constant 0 : index
    %c0_2 = arith.constant 0 : index
    %1 = vector.load %arg2[%c0_1, %c0_2] : memref<32x64xf32, #tpu.memory_space<vmem>>, vector<32x64xf32>
    %cst = arith.constant dense<0.000000e+00> : vector<8x64xf32>
    %2 = tpu.matmul %0, %1, %cst {dimension_numbers = #tpu.dot_dimension_numbers<[1], [0], [0], [1], [0, 0, 1, 1], [], []>} : vector<8x32xf32>, vector<32x64xf32>, vector<8x64xf32> -> vector<8x64xf32>
    %c0_3 = arith.constant 0 : index
    %c0_4 = arith.constant 0 : index
    %3 = vector.load %arg3[%c0_3, %c0_4] : memref<1x64xf32, #tpu.memory_space<vmem>>, vector<1x64xf32>
    %4 = vector.broadcast %3 : vector<1x64xf32> to vector<8x64xf32>
    %5 = arith.addf %2, %4 : vector<8x64xf32>
    %cst_5 = arith.constant 0.000000e+00 : f32
    %6 = vector.broadcast %cst_5 : f32 to vector<8x64xf32>
    %7 = arith.maximumf %5, %6 : vector<8x64xf32>
    %c0_6 = arith.constant 0 : index
    %c0_7 = arith.constant 0 : index
    %8 = vector.load %arg4[%c0_6, %c0_7] : memref<64x256xf32, #tpu.memory_space<vmem>>, vector<64x256xf32>
    %cst_8 = arith.constant dense<0.000000e+00> : vector<8x256xf32>
    %9 = tpu.matmul %7, %8, %cst_8 {dimension_numbers = #tpu.dot_dimension_numbers<[1], [0], [0], [1], [0, 0, 1, 1], [], []>} : vector<8x64xf32>, vector<64x256xf32>, vector<8x256xf32> -> vector<8x256xf32>
    %c0_9 = arith.constant 0 : index
    %c0_10 = arith.constant 0 : index
    %10 = vector.load %arg5[%c0_9, %c0_10] : memref<1x256xf32, #tpu.memory_space<vmem>>, vector<1x256xf32>
    %11 = vector.broadcast %10 : vector<1x256xf32> to vector<8x256xf32>
    %12 = arith.addf %9, %11 : vector<8x256xf32>
    %c0_11 = arith.constant 0 : index
    %c0_12 = arith.constant 0 : index
    %13 = vector.load %arg6[%c0_11, %c0_12] : memref<8x256xf32, #tpu.memory_space<vmem>>, vector<8x256xf32>
    tpu.vector_store %arg6[%c0_11, %c0_12], %12 {strides = array<i32>} : memref<8x256xf32, #tpu.memory_space<vmem>>, vector<8x256xf32>,
    return
  }
  func.func @transform_0(%arg0: i32) -> (i32, i32) {
    %c0_i32 = arith.constant 0 : i32
    %c0_i32_0 = arith.constant 0 : i32
    return %arg0, %c0_i32 : i32, i32
  }
  func.func @transform_1(%arg0: i32) -> (i32, i32) {
    %c0_i32 = arith.constant 0 : i32
    %c0_i32_0 = arith.constant 0 : i32
    %c0_i32_1 = arith.constant 0 : i32
    return %c0_i32, %c0_i32_0 : i32, i32
  }
  func.func @transform_2(%arg0: i32) -> (i32, i32) {
    %c0_i32 = arith.constant 0 : i32
    %c0_i32_0 = arith.constant 0 : i32
    %c0_i32_1 = arith.constant 0 : i32
    return %c0_i32, %c0_i32_0 : i32, i32
  }
  func.func @transform_3(%arg0: i32) -> (i32, i32) {
    %c0_i32 = arith.constant 0 : i32
    %c0_i32_0 = arith.constant 0 : i32
    %c0_i32_1 = arith.constant 0 : i32
    return %c0_i32, %c0_i32_0 : i32, i32
  }
  func.func @transform_4(%arg0: i32) -> (i32, i32) {
    %c0_i32 = arith.constant 0 : i32
    %c0_i32_0 = arith.constant 0 : i32
    %c0_i32_1 = arith.constant 0 : i32
    return %c0_i32, %c0_i32_0 : i32, i32
  }
  func.func @transform_5(%arg0: i32) -> (i32, i32) {
    %c0_i32 = arith.constant 0 : i32
    %c0_i32_0 = arith.constant 0 : i32
    return %arg0, %c0_i32 : i32, i32
  }
}

</mosaic_0001>

<bundles_post_ra>
// kernel: tpu_custom_call.1
= control target key start
LH: loop header
LB: loop body
LE: loop exit
PB: predicated region body
PF: predicated region fallthrough
CT: control target
= control target key end

     0   :  { %10 = vsyncpa [#allocation3], 0  ;;  %s441_s0 = inlined_call_operand.hbm [shape: f32[8,32], index: 0, kind: input, shape index: {}]   ;;  %s442_s1 = inlined_call_operand.hbm [shape: f32[32,64], index: 1, kind: input, shape index: {}]   ;;  %s443_s2 = inlined_call_operand.vmem [shape: f32[1,64], index: 2, kind: input, shape index: {}]   ;;  %s444_s3 = inlined_call_operand.hbm [shape: f32[64,256], index: 3, kind: input, shape index: {}]   ;;  %s445_s4 = inlined_call_operand.vmem [shape: f32[1,256], index: 4, kind: input, shape index: {}]   ;;  %s446_s5 = inlined_call_operand.hbm [shape: f32[8,256], index: 5, kind: output, shape index: {}]  }
   0x1   :  { %11 = vsyncpa [#allocation6], 0 }
   0x2   :  { %12 = vsyncpa [#allocation4], 0  ;;  %s383_s18 = smov [#allocation5]  }
   0x3   :  { %s28_s19 = sshll.u32 %s383_s18, 4  ;;  %s29_s19 = int_to_ptr.vmem [resolvable:$true] %s28_s19 }
   0x4   :  { %s305_s20 = scalar_lea.vmem %s29_s19, 512  ;;  %p310_p1 = scmp.lt.s32.totalorder %s29_s19, %s29_s19 }
   0x5   :  { %p306_p0 = scmp.ne.s32.totalorder %s29_s19, %s305_s20  ;;  %p311_p2 = scmp.lt.s32.totalorder %s305_s20, %s305_s20 }
   0x7   :  { %p312_p3 = por %p311_p2, %p310_p1 }
   0x9   :  { %p313_p4 = pnand %p312_p3, %p306_p0 }
   0xb   :  { %316 = shalt.err (!%p313_p4)
}
   0xc   :  { %s384_s21 = smov 128   ;;  %s385_s22 = smov 8  }
   0xd   :  { %34 = dma.hbm_to_vmem [thread:$0]  %s442_s1, 512, %s29_s19, [#allocation6], %s384_s21, %s384_s21, %s385_s22  }
   0xe   :  { %s386_s25 = smov [#allocation2]   ;;  %s387_s27 = smov [#allocation7]  }
   0xf   :  { %s19_s26 = sshll.u32 %s386_s25, 4  ;;  %s42_s28 = sshll.u32 %s387_s27, 4  ;;  %s20_s26 = int_to_ptr.vmem [resolvable:$true] %s19_s26  ;;  %s43_s28 = int_to_ptr.vmem [resolvable:$true] %s42_s28 }
  0x10   :  { %s325_s29 = scalar_lea.vmem %s20_s26, 128  ;;  %p330_p6 = scmp.lt.s32.totalorder %s20_s26, %s20_s26 }
  0x11   :  { %p326_p5 = scmp.ne.s32.totalorder %s20_s26, %s325_s29  ;;  %p331_p7 = scmp.lt.s32.totalorder %s325_s29, %s325_s29 }
  0x13   :  { %p332_p8 = por %p331_p7, %p330_p6 }
  0x15   :  { %p333_p9 = pnand %p332_p8, %p326_p5 }
  0x17   :  { %336 = shalt.err (!%p333_p9)
}
  0x18   :  { %22 = dma.hbm_to_vmem [thread:$0]  %s441_s0, 128, %s20_s26, [#allocation3]  }
  0x19   :  { %s345_s7 = scalar_lea.vmem %s43_s28, 2048  ;;  %p350_p11 = scmp.lt.s32.totalorder %s43_s28, %s43_s28 }
  0x1a   :  { %p346_p10 = scmp.ne.s32.totalorder %s43_s28, %s345_s7  ;;  %p351_p12 = scmp.lt.s32.totalorder %s345_s7, %s345_s7 }
  0x1c   :  { %p352_p13 = por %p351_p12, %p350_p11 }
  0x1e   :  { %p353_p0 = pnand %p352_p13, %p346_p10 }
  0x20   :  { %356 = shalt.err (!%p353_p0)
}
  0x21   :  { %s388_s1 = smov 256   ;;  %s389_s8 = smov 16  }
  0x22   :  { %48 = dma.hbm_to_vmem [thread:$0]  %s444_s3, 2048, %s43_s28, [#allocation6], %s388_s1, %s388_s1, %s389_s8  }
  0x23   :  { %377 = dma.done.wait [#allocation3], 128  }
  0x24   :  { %378 = vsyncadd [#allocation3], 4294967168 }
  0x25   :  { %379 = dma.done.wait [#allocation6], 2560  }
  0x26   :  { %380 = vsyncadd [#allocation6], 4294964736  ;;  %v390_v0 = vmov 0.0   ;;  %vm391_vm0 = vmmov 0   ;;  %v64_v1 = vld [vmem:[#allocation5 + $0x18] sm:$0xff]  ;;  %v63_v2 = vld [vmem:[#allocation5 + $0x10] sm:$0xff]  ;;  %v165_v27 = vlaneseq }
  0x27   :  { %276 = vmatprep.subr.mxu0 %v390_v0  ;;  %284 = vmatprep.mubr.msk.f32.mxu0 %vm391_vm0, %v390_v0  ;;  %v62_v3 = vld [vmem:[#allocation5 + $0x8] sm:$0xff]  ;;  %v162_v4 = vld [vmem:[#allocation7 + $0x78] sm:$0xff]  ;;  %v161_v5 = vld [vmem:[#allocation7 + $0x70] sm:$0xff]  ;;  %vm72_vm1 = vcmask 261120   ;;  %vm175_vm2 = vcmask 523264   ;;  %s392_s13 = smov [#allocation8]  }
  0x28   :  { %243 = vmatprep.mubr.f32.mxu1 %v390_v0  ;;  %277 = vmatpush3.msra.mxu0 %v64_v1  ;;  %v160_v6 = vld [vmem:[#allocation7 + $0x68] sm:$0xff]  ;;  %v159_v7 = vld [vmem:[#allocation7 + $0x60] sm:$0xff]  ;;  %v158_v8 = vld [vmem:[#allocation7 + $0x58] sm:$0xff]  ;;  %v166_v28 = vshrl.u32 %v165_v27, 7  ;;  %s258_s14 = sshll.u32 %s392_s13, 4  ;;  %s259_s14 = int_to_ptr.vmem [resolvable:$true] %s258_s14 }
  0x29   :  { %278 = vmatprep.subr.mxu0 %v390_v0  ;;  %195 = vmatprep.subr.mxu1 %v162_v4  ;;  %v61_v9 = vld [vmem:[#allocation5] sm:$0xff]  ;;  %v157_v10 = vld [vmem:[#allocation7 + $0x50] sm:$0xff]  ;;  %v60_v11 = vld [vmem:[#allocation2] sm:$0xff]  ;;  %p362_p2 = scmp.lt.s32.totalorder %s259_s14, %s259_s14 }
  0x2a   :  { %279 = vmatpush3.msra.mxu0 %v63_v2  ;;  %196 = vmatpush1.msra.mxu1 %v161_v5  ;;  %v156_v12 = vld [vmem:[#allocation7 + $0x48] sm:$0xff]  ;;  %v155_v13 = vld [vmem:[#allocation7 + $0x40] sm:$0xff]  ;;  %v154_v14 = vld [vmem:[#allocation7 + $0x38] sm:$0xff]  ;;  %v167_v29 = vsub.s32 0, %v166_v28  ;;  %v171_v31 = vsub.s32 1, %v166_v28 }
  0x2b   :  { %280 = vmatprep.subr.mxu0 %v390_v0  ;;  %197 = vmatprep.subr.mxu1 %v160_v6  ;;  %v153_v15 = vld [vmem:[#allocation7 + $0x30] sm:$0xff]  ;;  %v152_v16 = vld [vmem:[#allocation7 + $0x28] sm:$0xff]  ;;  %v151_v17 = vld [vmem:[#allocation7 + $0x20] sm:$0xff] }
  0x2c   :  { %281 = vmatpush3.msra.mxu0 %v62_v3  ;;  %198 = vmatpush1.msra.mxu1 %v159_v7  ;;  %v150_v18 = vld [vmem:[#allocation7 + $0x18] sm:$0xff]  ;;  %v149_v19 = vld [vmem:[#allocation7 + $0x10] sm:$0xff]  ;;  %v148_v20 = vld [vmem:[#allocation7 + $0x8] sm:$0xff] }
  0x2d   :  { %282 = vmatprep.subr.mxu0 %v390_v0  ;;  %199 = vmatprep.subr.mxu1 %v158_v8  ;;  %v147_v21 = vld [vmem:[#allocation7] sm:$0xff]  ;;  %v268_v22 = vld [vmem:[%s443_s2] ss:$0 sm:$0xff]  ;;  %s357_s2 = scalar_lea.vmem %s259_s14, 256 }
  0x2e   :  { %283 = vmatpush3.msra.mxu0 %v61_v9  ;;  %200 = vmatpush1.msra.mxu1 %v157_v10  ;;  %v163_v30 = vld [vmem:[%s445_s4] sm:$0x3]  ;;  %p358_p1 = scmp.ne.s32.totalorder %s259_s14, %s357_s2  ;;  %p363_p3 = scmp.lt.s32.totalorder %s357_s2, %s357_s2 }
  0x2f   :  { %285 = vmatmul.mubr.msk.f32.vlgmr.msra.gmra.mxu0 %vm72_vm1, %v60_v11  ;;  %201 = vmatprep.subr.mxu1 %v156_v12  ;;  %v168_v32 = vrot.slane %v163_v30, %v167_v29  ;;  %v172_v33 = vrot.slane %v163_v30, %v171_v31 }
  0x30   :  { %202 = vmatpush1.msra.mxu1 %v155_v13  ;;  %p364_p4 = por %p363_p3, %p362_p2 }
  0x31   :  { %203 = vmatprep.subr.mxu1 %v154_v14 }
  0x32   :  { %204 = vmatpush1.msra.mxu1 %v153_v15  ;;  %p365_p5 = pnand %p364_p4, %p358_p1 }
  0x33   :  { %205 = vmatprep.subr.mxu1 %v152_v16 }
  0x34   :  { %206 = vmatpush1.msra.mxu1 %v151_v17 }
  0x35   :  { %207 = vmatprep.subr.mxu1 %v150_v18 }
  0x36   :  { %208 = vmatpush1.msra.mxu1 %v149_v19 }
  0x37   :  { %209 = vmatprep.subr.mxu1 %v148_v20 }
  0x38   :  { %210 = vmatpush1.msra.mxu1 %v147_v21 }
  0xef   :  { %v142_v23 = vpop.f32.mrf.mxu0 }
  0xf0   :  { %v143_v24 = vadd.f32 %v268_v22, %v142_v23 }
  0xf1   :  { %v286_v25 = vpop.f32.mrf.mxu0 }
  0xf2   :  { %v146_v26 = vmax.f32 %v143_v24, 0.0 }
  0xf4   :  { %270 = vmatmul.mubr.msk.f32.vlgmr.msra.gmra.mxu1 %vm175_vm2, %v146_v26 }
 0x1b4   :  { %v245_v34 = vpop.f32.mrf.mxu1 }
 0x1b5   :  { %v246_v35 = vadd.f32 %v245_v34, %v168_v32 }
 0x1b6   :  { %v247_v36 = vpop.f32.mrf.mxu1 }
 0x1b7   :  { %250 = vst [vmem:[#allocation8] sm:$0xff] %v246_v35  ;;  %v248_v37 = vadd.f32 %v247_v36, %v172_v33 }
 0x1b9   :  { %251 = vst [vmem:[#allocation8 + $0x8] sm:$0xff] %v248_v37 }
 0x1ba   :  { %368 = shalt.err (!%p365_p5)
}
 0x1bb   :  { %261 = dma.vmem_to_hbm [thread:$0]  %s259_s14, 256, %s446_s5, [#allocation4]  }
 0x1bc   :  { %381 = dma.done.wait [#allocation4], 256  }
 0x1bd   :  { %382 = vsyncadd [#allocation4], 4294967040 }
 0x1be   :  { %265 = vsyncpa [#allocation3], 1 }
 0x1bf   :  { %266 = vsyncpa [#allocation6], 1 }
 0x1c0   :  { %267 = vsyncpa [#allocation4], 1 }

</bundles_post_ra>
